<compile_context>
chip_gen: v7x
topology: tpu7x:2x2x1
jax: 0.10.0
libtpu: 0.0.40
codegen_flags: <defaults>
</compile_context>

<pallas_src>
import functools
import math

import jax
import jax.numpy as jnp
from jax.experimental import pallas as pl
from jax.experimental.pallas import tpu as pltpu

LANES = 128
SUBLANES = 8


def _log_cosh_partial_kernel(pred_ref, true_ref, out_ref, acc_ref, *,
                             rows_total, tile_rows, steps_per_core,
                             inv_count, needs_mask):
    c = pl.program_id(0)   # core-split axis ("parallel")
    j = pl.program_id(1)   # sequential row-tile loop ("arbitrary")

    @pl.when(j == 0)
    def _():
        acc_ref[...] = jnp.zeros_like(acc_ref)

    x = pred_ref[...].astype(jnp.float32) - true_ref[...].astype(jnp.float32)

    if needs_mask:
        # Logical (unclamped) tile index: rows past the end of the real data
        # (partial last tile or fully-out-of-range clamped tiles) are zeroed
        # BEFORE exp/log1p so garbage reads can't turn into NaN.
        row0 = (c * steps_per_core + j) * tile_rows
        row_ids = jax.lax.broadcasted_iota(jnp.int32, x.shape, 0) + row0
        x = jnp.where(row_ids < rows_total, x, 0.0)

    # log_cosh(x) = |x| + log1p(exp(-2|x|)) - log(2); log_cosh(0) == 0 so
    # masked/padded elements contribute nothing to the sum.
    ax = jnp.abs(x)
    lc = ax + jnp.log1p(jnp.exp(-2.0 * ax)) - math.log(2.0)

    if tile_rows % SUBLANES == 0:
        acc_ref[...] += lc.reshape(tile_rows // SUBLANES, SUBLANES, LANES).sum(axis=0)
    else:
        acc_ref[0:1, :] += lc.sum(axis=0, keepdims=True)

    @pl.when(j == pl.num_programs(1) - 1)
    def _():
        out_ref[0] = acc_ref[...] * inv_count


def log_cosh_loss(y_pred: jax.Array, y_true: jax.Array, *,
                  tile_rows: int = 4096, num_cores: int = 2) -> jax.Array:
    assert y_pred.shape == y_true.shape
    n = y_pred.size
    inv_count = 1.0 / float(n)

    pred = y_pred.reshape(-1)
    true = y_true.reshape(-1)

    # Only pad (a few elements, native dtype) if numel isn't a lane multiple.
    if n % LANES != 0:
        pad = LANES - (n % LANES)
        pred = jnp.pad(pred, (0, pad))
        true = jnp.pad(true, (0, pad))

    rows = pred.shape[0] // LANES
    pred2d = pred.reshape(rows, LANES)
    true2d = true.reshape(rows, LANES)

    # Block row dim: multiple of 8 (tile_rows) or the full row extent.
    tile = tile_rows if rows >= tile_rows else rows
    total_tiles = pl.cdiv(rows, tile)
    ncores = num_cores if total_tiles >= num_cores else 1
    steps = pl.cdiv(total_tiles, ncores)
    needs_mask = (ncores * steps * tile != rows)

    def in_map(c, j):
        # Clamp so every auto-DMA'd block starts inside the array; logically
        # out-of-range tiles are zeroed by the in-kernel mask.
        return (jnp.minimum(c * steps + j, total_tiles - 1), 0)

    kernel = functools.partial(
        _log_cosh_partial_kernel,
        rows_total=rows, tile_rows=tile, steps_per_core=steps,
        inv_count=inv_count, needs_mask=needs_mask)

    partials = pl.pallas_call(
        kernel,
        out_shape=jax.ShapeDtypeStruct((ncores, SUBLANES, LANES), jnp.float32),
        grid_spec=pltpu.PrefetchScalarGridSpec(
            num_scalar_prefetch=0,
            grid=(ncores, steps),
            in_specs=[
                pl.BlockSpec((tile, LANES), in_map),
                pl.BlockSpec((tile, LANES), in_map),
            ],
            out_specs=pl.BlockSpec((1, SUBLANES, LANES), lambda c, j: (c, 0, 0)),
            scratch_shapes=[pltpu.VMEM((SUBLANES, LANES), jnp.float32)],
        ),
        compiler_params=pltpu.CompilerParams(
            dimension_semantics=("parallel", "arbitrary"),
            vmem_limit_bytes=32 * 1024 * 1024,
        ),
    )(pred2d, true2d)

    # Tiny final reduction of the lane-dense per-core partial sums.
    return jnp.sum(partials)


def _log_cosh_ref(y_pred, y_true):
    x = (y_pred - y_true).astype(jnp.float32)
    z = -2.0 * x
    sp = jnp.maximum(z, 0.0) + jnp.log1p(jnp.exp(-jnp.abs(z)))
    return jnp.mean(x + sp - math.log(2.0))


if __name__ == "__main__":
    key = jax.random.PRNGKey(0)

    # Primary check: NCHW shape from the module's typical use.
    k1, k2 = jax.random.split(key)
    shape = (2, 4, 16, 16)
    y_pred = jax.random.normal(k1, shape, dtype=jnp.float32)
    y_true = jax.random.normal(k2, shape, dtype=jnp.float32)
    loss = jax.block_until_ready(log_cosh_loss(y_pred, y_true))
    ref = _log_cosh_ref(y_pred, y_true)
    assert jnp.allclose(loss, ref, atol=1e-5, rtol=1e-5), (loss, ref)

    # Secondary check: odd size exercising the (rare) lane-pad path.
    k3, k4 = jax.random.split(k1)
    a = jax.random.normal(k3, (3, 5, 7, 11), dtype=jnp.float32)
    b = jax.random.normal(k4, (3, 5, 7, 11), dtype=jnp.float32)
    loss2 = jax.block_until_ready(log_cosh_loss(a, b))
    ref2 = _log_cosh_ref(a, b)
    assert jnp.allclose(loss2, ref2, atol=1e-5, rtol=1e-5), (loss2, ref2)

    # Tertiary check: small tiles + 2-core split + in-kernel tail masking.
    k5, k6 = jax.random.split(k2)
    c = jax.random.normal(k5, (2, 4, 16, 20), dtype=jnp.float32)
    d = jax.random.normal(k6, (2, 4, 16, 20), dtype=jnp.float32)
    loss3 = jax.block_until_ready(log_cosh_loss(c, d, tile_rows=8, num_cores=2))
    ref3 = _log_cosh_ref(c, d)
    assert jnp.allclose(loss3, ref3, atol=1e-5, rtol=1e-5), (loss3, ref3)

    print("KERNEL_OK")
</pallas_src>

<mosaic_0001>
module attributes {stable_mosaic.version = 11 : i64} {
  func.func @_log_cosh_partial_kernel(%arg0: i32, %arg1: i32, %arg2: memref<16x128xf32, #tpu.memory_space<vmem>>, %arg3: memref<16x128xf32, #tpu.memory_space<vmem>>, %arg4: memref<1x8x128xf32, #tpu.memory_space<vmem>>, %arg5: memref<8x128xf32, #tpu.memory_space<vmem>>) attributes {dimension_semantics = [#tpu.dimension_semantics<parallel>, #tpu.dimension_semantics<arbitrary>], iteration_bounds = array<i64: 1, 1>, scalar_prefetch = 0 : i64, scratch_operands = 1 : i64, tpu.core_type = #tpu.core_type<tc>, window_params = [{transform_indices = @transform_0, window_bounds = array<i64: 16, 128>}, {transform_indices = @transform_1, window_bounds = array<i64: 16, 128>}, {transform_indices = @transform_2, window_bounds = array<i64: 1, 8, 128>}]} {
    %c0_i32 = arith.constant 0 : i32
    %0 = arith.cmpi eq, %arg1, %c0_i32 : i32
    %1 = arith.extui %0 : i1 to i32
    %c0_i32_0 = arith.constant 0 : i32
    %2 = arith.cmpi ne, %1, %c0_i32_0 : i32
    scf.if %2 {
      %cst_12 = arith.constant 0.000000e+00 : f32
      %22 = vector.broadcast %cst_12 : f32 to vector<8x128xf32>
      %c0_13 = arith.constant 0 : index
      %c0_14 = arith.constant 0 : index
      %23 = vector.load %arg5[%c0_13, %c0_14] : memref<8x128xf32, #tpu.memory_space<vmem>>, vector<8x128xf32>
      tpu.vector_store %arg5[%c0_13, %c0_14], %22 {strides = array<i32>} : memref<8x128xf32, #tpu.memory_space<vmem>>, vector<8x128xf32>,
    } else {
    }
    %c0 = arith.constant 0 : index
    %c0_1 = arith.constant 0 : index
    %3 = vector.load %arg2[%c0, %c0_1] : memref<16x128xf32, #tpu.memory_space<vmem>>, vector<16x128xf32>
    %c0_2 = arith.constant 0 : index
    %c0_3 = arith.constant 0 : index
    %4 = vector.load %arg3[%c0_2, %c0_3] : memref<16x128xf32, #tpu.memory_space<vmem>>, vector<16x128xf32>
    %5 = arith.subf %3, %4 : vector<16x128xf32>
    %6 = math.absf %5 : vector<16x128xf32>
    %cst = arith.constant -2.000000e+00 : f32
    %7 = vector.broadcast %cst : f32 to vector<16x128xf32>
    %8 = arith.mulf %7, %6 : vector<16x128xf32>
    %9 = math.exp %8 : vector<16x128xf32>
    %10 = math.log1p %9 : vector<16x128xf32>
    %11 = arith.addf %6, %10 : vector<16x128xf32>
    %cst_4 = arith.constant 0.693147182 : f32
    %12 = vector.broadcast %cst_4 : f32 to vector<16x128xf32>
    %13 = arith.subf %11, %12 : vector<16x128xf32>
    %c0_5 = arith.constant 0 : index
    %c0_6 = arith.constant 0 : index
    %14 = vector.load %arg5[%c0_5, %c0_6] : memref<8x128xf32, #tpu.memory_space<vmem>>, vector<8x128xf32>
    %15 = vector.shape_cast %13 : vector<16x128xf32> to vector<2x8x128xf32>
    %cst_7 = arith.constant dense<0.000000e+00> : vector<8x128xf32>
    %16 = vector.multi_reduction <add>, %15, %cst_7 [0] : vector<2x8x128xf32> to vector<8x128xf32>
    %17 = arith.addf %14, %16 : vector<8x128xf32>
    %c0_8 = arith.constant 0 : index
    %c0_9 = arith.constant 0 : index
    %18 = vector.load %arg5[%c0_8, %c0_9] : memref<8x128xf32, #tpu.memory_space<vmem>>, vector<8x128xf32>
    tpu.vector_store %arg5[%c0_8, %c0_9], %17 {strides = array<i32>} : memref<8x128xf32, #tpu.memory_space<vmem>>, vector<8x128xf32>,
    %c0_i32_10 = arith.constant 0 : i32
    %19 = arith.cmpi eq, %arg1, %c0_i32_10 : i32
    %20 = arith.extui %19 : i1 to i32
    %c0_i32_11 = arith.constant 0 : i32
    %21 = arith.cmpi ne, %20, %c0_i32_11 : i32
    scf.if %21 {
      %c0_12 = arith.constant 0 : index
      %c0_13 = arith.constant 0 : index
      %22 = vector.load %arg5[%c0_12, %c0_13] : memref<8x128xf32, #tpu.memory_space<vmem>>, vector<8x128xf32>
      %cst_14 = arith.constant 4.8828125E-4 : f32
      %23 = vector.broadcast %cst_14 : f32 to vector<8x128xf32>
      %24 = arith.mulf %22, %23 : vector<8x128xf32>
      %c0_15 = arith.constant 0 : index
      %c0_16 = arith.constant 0 : index
      %c0_17 = arith.constant 0 : index
      %25 = vector.load %arg4[%c0_15, %c0_16, %c0_17] : memref<1x8x128xf32, #tpu.memory_space<vmem>>, vector<1x8x128xf32>
      %26 = vector.shape_cast %25 : vector<1x8x128xf32> to vector<8x128xf32>
      %27 = vector.shape_cast %24 : vector<8x128xf32> to vector<1x8x128xf32>
      tpu.vector_store %arg4[%c0_15, %c0_16, %c0_17], %27 {strides = array<i32>} : memref<1x8x128xf32, #tpu.memory_space<vmem>>, vector<1x8x128xf32>,
    } else {
    }
    return
  }
  func.func @transform_0(%arg0: i32, %arg1: i32) -> (i32, i32) {
    %c1_i32 = arith.constant 1 : i32
    %0 = arith.muli %arg0, %c1_i32 : i32
    %1 = arith.addi %0, %arg1 : i32
    %c0_i32 = arith.constant 0 : i32
    %2 = arith.minsi %1, %c0_i32 : i32
    %c0_i32_0 = arith.constant 0 : i32
    %c0_i32_1 = arith.constant 0 : i32
    return %2, %c0_i32_0 : i32, i32
  }
  func.func @transform_1(%arg0: i32, %arg1: i32) -> (i32, i32) {
    %c1_i32 = arith.constant 1 : i32
    %0 = arith.muli %arg0, %c1_i32 : i32
    %1 = arith.addi %0, %arg1 : i32
    %c0_i32 = arith.constant 0 : i32
    %2 = arith.minsi %1, %c0_i32 : i32
    %c0_i32_0 = arith.constant 0 : i32
    %c0_i32_1 = arith.constant 0 : i32
    return %2, %c0_i32_0 : i32, i32
  }
  func.func @transform_2(%arg0: i32, %arg1: i32) -> (i32, i32, i32) {
    %c0_i32 = arith.constant 0 : i32
    %c0_i32_0 = arith.constant 0 : i32
    %c0_i32_1 = arith.constant 0 : i32
    return %arg0, %c0_i32, %c0_i32_0 : i32, i32, i32
  }
}

</mosaic_0001>

<bundles_post_ra>
// kernel: tpu_custom_call.1
= control target key start
LH: loop header
LB: loop body
LE: loop exit
PB: predicated region body
PF: predicated region fallthrough
CT: control target
= control target key end

     0   :  { %7 = vsyncpa [#allocation4], 0  ;;  %s274_s0 = inlined_call_operand.hbm [shape: f32[16,128], index: 0, kind: input, shape index: {}]   ;;  %s275_s1 = inlined_call_operand.hbm [shape: f32[16,128], index: 1, kind: input, shape index: {}]   ;;  %s276_s2 = inlined_call_operand.hbm [shape: f32[1,8,128], index: 2, kind: output, shape index: {}]  }
   0x1   :  { %8 = vsyncpa [#allocation7], 0 }
   0x2   :  { %9 = vsyncpa [#allocation5], 0  ;;  %s218_s9 = smov [#allocation3]   ;;  %s146_s13 = scalar_lea.hbm %s274_s0, 256 }
   0x3   :  { %s21_s10 = sshll.u32 %s218_s9, 4  ;;  %p147_p0 = scmp.ne.s32.totalorder %s274_s0, %s146_s13  ;;  %s22_s10 = int_to_ptr.vmem [resolvable:$true] %s21_s10 }
   0x4   :  { %p150_p1 = scmp.lt.u32.totalorder %s146_s13, %s274_s0 }
   0x6   :  { %p152_p2 = pnand %p150_p1, %p147_p0 }
   0x8   :  { %155 = shalt.err (!%p152_p2)
}
   0x9   :  { %s156_s18 = scalar_lea.vmem %s22_s10, 256  ;;  %p161_p4 = scmp.lt.s32.totalorder %s22_s10, %s22_s10 }
   0xa   :  { %p157_p3 = scmp.ne.s32.totalorder %s22_s10, %s156_s18  ;;  %p162_p5 = scmp.lt.s32.totalorder %s156_s18, %s156_s18 }
   0xc   :  { %p163_p6 = por %p162_p5, %p161_p4 }
   0xe   :  { %p164_p7 = pnand %p163_p6, %p157_p3 }
  0x10   :  { %167 = shalt.err (!%p164_p7)
}
  0x11   :  { %s219_s19 = smov 128   ;;  %s220_s20 = smov 8  }
  0x12   :  { %27 = dma.hbm_to_vmem [thread:$0]  %s274_s0, 256, %s22_s10, [#allocation4], %s219_s19, %s219_s19, %s220_s20  }
  0x13   :  { %s221_s23 = smov [#allocation6]   ;;  %s168_s27 = scalar_lea.hbm %s275_s1, 256 }
  0x14   :  { %s39_s24 = sshll.u32 %s221_s23, 4  ;;  %p169_p8 = scmp.ne.s32.totalorder %s275_s1, %s168_s27  ;;  %s40_s24 = int_to_ptr.vmem [resolvable:$true] %s39_s24 }
  0x15   :  { %p172_p9 = scmp.lt.u32.totalorder %s168_s27, %s275_s1 }
  0x17   :  { %p174_p10 = pnand %p172_p9, %p169_p8 }
  0x19   :  { %177 = shalt.err (!%p174_p10)
}
  0x1a   :  { %s178_s4 = scalar_lea.vmem %s40_s24, 256  ;;  %p183_p12 = scmp.lt.s32.totalorder %s40_s24, %s40_s24 }
  0x1b   :  { %p179_p11 = scmp.ne.s32.totalorder %s40_s24, %s178_s4  ;;  %p184_p13 = scmp.lt.s32.totalorder %s178_s4, %s178_s4 }
  0x1d   :  { %p185_p0 = por %p184_p13, %p183_p12 }
  0x1f   :  { %p186_p1 = pnand %p185_p0, %p179_p11 }
  0x21   :  { %189 = shalt.err (!%p186_p1)
}
  0x22   :  { %45 = dma.hbm_to_vmem [thread:$0]  %s275_s1, 256, %s40_s24, [#allocation7], %s219_s19, %s219_s19, %s220_s20  }
  0x23   :  { %212 = dma.done.wait [#allocation4], 256  }
  0x24   :  { %213 = vsyncadd [#allocation4], 4294967040 }
  0x25   :  { %214 = dma.done.wait [#allocation7], 256  }
  0x26   :  { %215 = vsyncadd [#allocation7], 4294967040  ;;  %v65_v0 = vld [vmem:[#allocation3] sm:$0xff]  ;;  %v66_v1 = vld [vmem:[#allocation3 + $0x8] sm:$0xff]  ;;  %s222_s1 = smov [#allocation8]  }
  0x27   :  { %v67_v2 = vld [vmem:[#allocation6] sm:$0xff]  ;;  %v68_v3 = vld [vmem:[#allocation6 + $0x8] sm:$0xff]  ;;  %s117_s6 = sshll.u32 %s222_s1, 4  ;;  %s118_s6 = int_to_ptr.vmem [resolvable:$true] %s117_s6 }
  0x28   :  { %v69_v4 = vsub.f32 %v65_v0, %v67_v2  ;;  %v70_v5 = vsub.f32 %v66_v1, %v68_v3  ;;  %s190_s7 = scalar_lea.vmem %s118_s6, 128  ;;  %p195_p3 = scmp.lt.s32.totalorder %s118_s6, %s118_s6 }
  0x29   :  { %p191_p2 = scmp.ne.s32.totalorder %s118_s6, %s190_s7  ;;  %p196_p4 = scmp.lt.s32.totalorder %s190_s7, %s190_s7 }
  0x2a   :  { %v71_v6 = vand.u32 2147483647, %v69_v4  ;;  %v72_v7 = vand.u32 2147483647, %v70_v5 }
  0x2b   :  { %p197_p5 = por %p196_p4, %p195_p3 }
  0x2c   :  { %v73_v8 = vmul.f32 -2.0, %v71_v6  ;;  %v74_v9 = vmul.f32 -2.0, %v72_v7 }
  0x2d   :  { %p198_p6 = pnand %p197_p5, %p191_p2 }
  0x2e   :  { %v75_v10 = vmul.f32 1.442695, %v73_v8  ;;  %v77_v11 = vmul.f32 1.442695, %v74_v9 }
  0x30   :  { %138 = vpow2.f32 %v75_v10 }
  0x31   :  { %140 = vpow2.f32 %v77_v11 }
  0x3a   :  { %v139_v12 = vpop.eup %138 }
  0x3b   :  { %v141_v13 = vpop.eup %140  ;;  %v79_v14 = vadd.f32 1.0, %v139_v12  ;;  %v82_v16 = vmul.f32 -0.5, %v139_v12  ;;  %v85_v19 = vand.u32 2147483647, %v139_v12 }
  0x3c   :  { %v88_v15 = vadd.f32 1.0, %v141_v13  ;;  %v91_v17 = vmul.f32 -0.5, %v141_v13  ;;  %v94_v21 = vand.u32 2147483647, %v141_v13 }
  0x3d   :  { %142 = vlog2.f32 %v79_v14  ;;  %v83_v18 = vadd.f32 1.0, %v82_v16  ;;  %vm86_vm0 = vcmp.lt.f32.partialorder %v85_v19, 0.0004427343 }
  0x3e   :  { %144 = vlog2.f32 %v88_v15  ;;  %v92_v20 = vadd.f32 1.0, %v91_v17  ;;  %vm95_vm1 = vcmp.lt.f32.partialorder %v94_v21, 0.0004427343 }
  0x3f   :  { %v84_v22 = vmul.f32 %v139_v12, %v83_v18 }
  0x40   :  { %v93_v24 = vmul.f32 %v141_v13, %v92_v20 }
  0x47   :  { %v143_v23 = vpop.eup %142 }
  0x48   :  { %v145_v25 = vpop.eup %144  ;;  %v81_v26 = vmul.f32 0.6931472, %v143_v23 }
  0x49   :  { %v90_v27 = vmul.f32 0.6931472, %v145_v25 }
  0x4a   :  { %v87_v28 = vsel %vm86_vm0, %v84_v22, %v81_v26 }
  0x4b   :  { %v96_v29 = vsel %vm95_vm1, %v93_v24, %v90_v27  ;;  %v97_v30 = vadd.f32 %v87_v28, %v71_v6 }
  0x4c   :  { %v98_v31 = vadd.f32 %v96_v29, %v72_v7 }
  0x4d   :  { %v131_v32 = vadd.f32 -0.6931472, %v97_v30 }
  0x4e   :  { %v132_v33 = vadd.f32 -0.6931472, %v98_v31 }
  0x50   :  { %v102_v34 = vadd.f32 %v132_v33, %v131_v32 }
  0x52   :  { %v109_v35 = vmul.f32 0.00048828125, %v102_v34 }
  0x54   :  { %110 = vst [vmem:[#allocation8] sm:$0xff] %v109_v35 }
  0x55   :  { %201 = shalt.err (!%p198_p6)
}
  0x56   :  { %s202_s10 = scalar_lea.hbm %s276_s2, 128 }
  0x57   :  { %p203_p7 = scmp.ne.s32.totalorder %s276_s2, %s202_s10  ;;  %p206_p8 = scmp.lt.u32.totalorder %s202_s10, %s276_s2 }
  0x59   :  { %p208_p9 = pnand %p206_p8, %p203_p7 }
  0x5b   :  { %211 = shalt.err (!%p208_p9)
}
  0x5c   :  { %120 = dma.vmem_to_hbm [thread:$0]  %s118_s6, 128, %s276_s2, [#allocation5]  }
  0x5d   :  { %216 = dma.done.wait [#allocation5], 128  }
  0x5e   :  { %217 = vsyncadd [#allocation5], 4294967168 }
  0x5f   :  { %124 = vsyncpa [#allocation4], 1 }
  0x60   :  { %125 = vsyncpa [#allocation7], 1 }
  0x61   :  { %126 = vsyncpa [#allocation5], 1 }

</bundles_post_ra>
